<compile_context>
chip_gen: v6e
topology: v6e:2x2x1
jax: 0.10.0
libtpu: 0.0.40
codegen_flags: <defaults>
</compile_context>

<pallas_src>
import functools

import jax
import jax.numpy as jnp
from jax import lax
from jax.experimental import pallas as pl
from jax.experimental.pallas import tpu as pltpu


# ---------------------------------------------------------------------------
# Kernels
# ---------------------------------------------------------------------------
def _hidden_kernel(x_ref, w1_ref, h_ref, *, inv_c):
    """Stage 1: per-core partial of (sum_c X[c,:]) @ W1.T over its V tiles.

    Grid: (P, Kp).  Axis 0 ("parallel") = per-core slice of the V reduction,
    axis 1 ("arbitrary") = V tiles within the slice.  h_ref is the (1, E) row
    of the (P, E) partial-sum output owned by this core (output-resident
    accumulator across axis 1).
    """
    k = pl.program_id(1)

    @pl.when(k == 0)
    def _():
        h_ref[...] = jnp.zeros_like(h_ref)

    # Fold the batch mean first: (C, tk) -> (1, tk) sum (exact for one-hot),
    # then a (1, tk) x (E, tk)^T matvec on the MXU, accumulated in f32.
    xsum = jnp.sum(x_ref[...].astype(jnp.float32), axis=0, keepdims=True)
    xsum = xsum.astype(w1_ref.dtype)
    h_ref[...] += lax.dot_general(
        xsum, w1_ref[...],
        dimension_numbers=(((1,), (1,)), ((), ())),       # contract V
        preferred_element_type=jnp.float32)                # (1, E) f32

    @pl.when(k == pl.num_programs(1) - 1)
    def _():
        h_ref[...] *= inv_c                                # mean scale


def _output_kernel(h_ref, w2_ref, o_ref):
    """Stage 2: combine per-core partials, then out tile = hidden @ W2_tile.T."""
    h = jnp.sum(h_ref[...], axis=0, keepdims=True)         # (1, E) f32, tiny
    h = h.astype(w2_ref.dtype)
    o_ref[...] = lax.dot_general(
        h, w2_ref[...],                                    # (1,E),(tn,E)
        dimension_numbers=(((1,), (1,)), ((), ())),        # contract E
        preferred_element_type=jnp.float32).astype(o_ref.dtype)   # (1, tn)


# ---------------------------------------------------------------------------
# Tiling / padding helpers
# ---------------------------------------------------------------------------
def _round_up(x, m):
    return ((x + m - 1) // m) * m


def _vmem_budget():
    """(double-buffered-slab budget, vmem_limit_bytes) from the chip's VMEM."""
    try:
        cap = int(pltpu.get_tpu_info().vmem_capacity_bytes)
    except Exception:
        cap = 64 << 20                       # v7x physical VMEM: be conservative
    slab = max(4 << 20, min(cap // 4, 16 << 20))
    limit = min(cap * 3 // 4, slab + (24 << 20))
    return slab, limit


def _pick_tile(slab_budget, per_lane_bytes, v, max_tile=None):
    """Largest 128-multiple lane tile whose streamed, double-buffered slab fits."""
    v128 = _round_up(max(v, 1), 128)
    for cand in (16384, 8192, 4096, 2048, 1024, 512, 256, 128):
        if max_tile is not None and cand > max_tile:
            continue
        if cand <= v128 and cand * per_lane_bytes <= slab_budget:
            return cand
    return 128


def _pad_axis(a, target, axis):
    pad = target - a.shape[axis]
    if pad == 0:
        return a
    widths = [(0, 0)] * a.ndim
    widths[axis] = (0, pad)
    return jnp.pad(a, widths)


# ---------------------------------------------------------------------------
# Wrapper
# ---------------------------------------------------------------------------
def cbow_forward(x, w1, w2, *, stream_dtype=jnp.bfloat16, max_tile=None):
    """x: (C, V); w1: (E, V); w2: (V, E) — native nn.Linear.weight layouts.

    stream_dtype: dtype the weights/X are streamed through HBM in (default
    bf16; pass f32 for bit-faithful results).  Accumulation is always f32.
    """
    C, V = x.shape
    E, V1 = w1.shape
    V2, E2 = w2.shape
    assert V1 == V and V2 == V and E2 == E

    wb = jnp.dtype(stream_dtype).itemsize
    slab_budget, vmem_limit = _vmem_budget()

    # Double-buffered streamed bytes per lane of V for each stage.
    tk = _pick_tile(slab_budget, 2 * (E + C) * wb, V, max_tile)       # stage 1
    tn = _pick_tile(slab_budget, 2 * (E * wb + 4), V, max_tile)       # stage 2

    # One-time casts (callers that reuse weights should pre-cast to bf16).
    xs = x.astype(stream_dtype)
    w1s = w1.astype(stream_dtype)
    w2s = w2.astype(stream_dtype)

    # ---- Stage 1: hidden partials = sum-over-V-slice of mean(X,0) @ W1.T ----
    k_total = -(-V // tk)
    P = 2 if k_total >= 2 else 1                 # use both v7x TCs; free on 1-TC
    v1_pad = _round_up(V, P * tk)
    kp = v1_pad // (P * tk)

    xs_p = _pad_axis(xs, v1_pad, axis=1)
    w1s_p = _pad_axis(w1s, v1_pad, axis=1)

    partial = pl.pallas_call(
        functools.partial(_hidden_kernel, inv_c=1.0 / C),
        out_shape=jax.ShapeDtypeStruct((P, E), jnp.float32),
        grid_spec=pltpu.PrefetchScalarGridSpec(
            num_scalar_prefetch=0,
            grid=(P, kp),
            in_specs=[
                pl.BlockSpec((C, tk), lambda p, k: (0, p * kp + k)),   # X tile
                pl.BlockSpec((E, tk), lambda p, k: (0, p * kp + k)),   # W1 tile
            ],
            out_specs=pl.BlockSpec((1, E), lambda p, k: (p, 0)),       # per-core acc
        ),
        compiler_params=pltpu.CompilerParams(
            dimension_semantics=("parallel", "arbitrary"),
            vmem_limit_bytes=vmem_limit),
    )(xs_p, w1s_p)

    # ---- Stage 2: out = hidden @ W2.T over lane-dense V output tiles --------
    v2_pad = _round_up(V, tn)
    w2s_p = _pad_axis(w2s, v2_pad, axis=0)

    out_pad = pl.pallas_call(
        _output_kernel,
        out_shape=jax.ShapeDtypeStruct((1, v2_pad), jnp.float32),
        grid_spec=pltpu.PrefetchScalarGridSpec(
            num_scalar_prefetch=0,
            grid=(v2_pad // tn,),
            in_specs=[
                pl.BlockSpec((P, E), lambda j: (0, 0)),    # hidden partials (resident)
                pl.BlockSpec((tn, E), lambda j: (j, 0)),   # W2 tile (native layout)
            ],
            out_specs=pl.BlockSpec((1, tn), lambda j: (0, j)),
        ),
        compiler_params=pltpu.CompilerParams(
            dimension_semantics=("parallel",),
            vmem_limit_bytes=vmem_limit),
    )(partial, w2s_p)

    return out_pad[:, :V]


def _reference(x, w1, w2):
    return jnp.mean(x @ w1.T, axis=0, keepdims=True) @ w2.T


# ---------------------------------------------------------------------------
# Demo / self-check
# ---------------------------------------------------------------------------
if __name__ == "__main__":
    # Vocabulary derived exactly like the PyTorch script (9 unique words).
    sentences = ['Kage is Teacher', 'Mazong is Boss', 'Niuzong is Boss',
                 'Xiaobing is Student', 'Xiaoxue is Student']
    words = ' '.join(sentences).split()
    word_list = list(set(words))
    voc_size = len(word_list)          # 9
    embedding_size = 8
    num_context = 4

    key = jax.random.PRNGKey(0)
    k_w1, k_w2, k_idx = jax.random.split(key, 3)
    w1 = jax.random.normal(k_w1, (embedding_size, voc_size), jnp.float32) * 0.1
    w2 = jax.random.normal(k_w2, (voc_size, embedding_size), jnp.float32) * 0.1
    ctx_ids = jax.random.randint(k_idx, (num_context,), 0, voc_size)
    x = jax.nn.one_hot(ctx_ids, voc_size, dtype=jnp.float32)

    ref = _reference(x, w1, w2)

    # f32 streaming path: strict check.
    out32 = jax.block_until_ready(cbow_forward(x, w1, w2, stream_dtype=jnp.float32))
    assert out32.shape == (1, voc_size)
    assert jnp.allclose(out32, ref, atol=1e-5, rtol=1e-4)

    # bf16 streaming path (default, ~2x HBM traffic): looser tolerance.
    outbf = jax.block_until_ready(cbow_forward(x, w1, w2))
    assert outbf.shape == (1, voc_size)
    assert jnp.allclose(outbf, ref, atol=5e-3, rtol=5e-2)

    # Ragged V (not 128-divisible) with a capped tile so the grid really has
    # multiple reduction steps, a 2-way parallel V split, and zero-padding.
    Vr, Er, Cr = 600, 32, 4
    kk = jax.random.split(jax.random.PRNGKey(1), 3)
    w1r = jax.random.normal(kk[0], (Er, Vr), jnp.float32) * 0.1
    w2r = jax.random.normal(kk[1], (Vr, Er), jnp.float32) * 0.1
    idr = jax.random.randint(kk[2], (Cr,), 0, Vr)
    xr = jax.nn.one_hot(idr, Vr, dtype=jnp.float32)
    refr = _reference(xr, w1r, w2r)

    outr32 = jax.block_until_ready(
        cbow_forward(xr, w1r, w2r, stream_dtype=jnp.float32, max_tile=128))
    assert outr32.shape == (1, Vr)
    assert jnp.allclose(outr32, refr, atol=1e-5, rtol=1e-4)

    outrbf = jax.block_until_ready(cbow_forward(xr, w1r, w2r, max_tile=128))
    assert outrbf.shape == (1, Vr)
    assert jnp.allclose(outrbf, refr, atol=5e-3, rtol=5e-2)

    print("KERNEL_OK")
</pallas_src>

<mosaic_0001>
module attributes {stable_mosaic.version = 11 : i64} {
  func.func @_hidden_kernel(%arg0: i32, %arg1: i32, %arg2: memref<4x128xf32, #tpu.memory_space<vmem>>, %arg3: memref<8x128xf32, #tpu.memory_space<vmem>>, %arg4: memref<1x8xf32, #tpu.memory_space<vmem>>) attributes {dimension_semantics = [#tpu.dimension_semantics<parallel>, #tpu.dimension_semantics<arbitrary>], iteration_bounds = array<i64: 1, 1>, scalar_prefetch = 0 : i64, scratch_operands = 0 : i64, tpu.core_type = #tpu.core_type<tc>, window_params = [{transform_indices = @transform_0, window_bounds = array<i64: 4, 128>}, {transform_indices = @transform_1, window_bounds = array<i64: 8, 128>}, {transform_indices = @transform_2, window_bounds = array<i64: 1, 8>}]} {
    %c0_i32 = arith.constant 0 : i32
    %0 = arith.cmpi eq, %arg1, %c0_i32 : i32
    %1 = arith.extui %0 : i1 to i32
    %c0_i32_0 = arith.constant 0 : i32
    %2 = arith.cmpi ne, %1, %c0_i32_0 : i32
    scf.if %2 {
      %cst_11 = arith.constant 0.000000e+00 : f32
      %14 = vector.broadcast %cst_11 : f32 to vector<1x8xf32>
      %c0_12 = arith.constant 0 : index
      %c0_13 = arith.constant 0 : index
      %15 = vector.load %arg4[%c0_12, %c0_13] : memref<1x8xf32, #tpu.memory_space<vmem>>, vector<1x8xf32>
      tpu.vector_store %arg4[%c0_12, %c0_13], %14 {strides = array<i32>} : memref<1x8xf32, #tpu.memory_space<vmem>>, vector<1x8xf32>,
    } else {
    }
    %c0 = arith.constant 0 : index
    %c0_1 = arith.constant 0 : index
    %3 = vector.load %arg2[%c0, %c0_1] : memref<4x128xf32, #tpu.memory_space<vmem>>, vector<4x128xf32>
    %cst = arith.constant dense<0.000000e+00> : vector<128xf32>
    %4 = vector.multi_reduction <add>, %3, %cst [0] : vector<4x128xf32> to vector<128xf32>
    %5 = vector.shape_cast %4 : vector<128xf32> to vector<1x128xf32>
    %c0_2 = arith.constant 0 : index
    %c0_3 = arith.constant 0 : index
    %6 = vector.load %arg4[%c0_2, %c0_3] : memref<1x8xf32, #tpu.memory_space<vmem>>, vector<1x8xf32>
    %c0_4 = arith.constant 0 : index
    %c0_5 = arith.constant 0 : index
    %7 = vector.load %arg3[%c0_4, %c0_5] : memref<8x128xf32, #tpu.memory_space<vmem>>, vector<8x128xf32>
    %cst_6 = arith.constant dense<0.000000e+00> : vector<1x8xf32>
    %8 = tpu.matmul %5, %7, %cst_6 {dimension_numbers = #tpu.dot_dimension_numbers<[1], [1], [0], [0], [0, 0, 1, 0], [], []>} : vector<1x128xf32>, vector<8x128xf32>, vector<1x8xf32> -> vector<1x8xf32>
    %9 = arith.addf %6, %8 : vector<1x8xf32>
    %c0_7 = arith.constant 0 : index
    %c0_8 = arith.constant 0 : index
    %10 = vector.load %arg4[%c0_7, %c0_8] : memref<1x8xf32, #tpu.memory_space<vmem>>, vector<1x8xf32>
    tpu.vector_store %arg4[%c0_7, %c0_8], %9 {strides = array<i32>} : memref<1x8xf32, #tpu.memory_space<vmem>>, vector<1x8xf32>,
    %c0_i32_9 = arith.constant 0 : i32
    %11 = arith.cmpi eq, %arg1, %c0_i32_9 : i32
    %12 = arith.extui %11 : i1 to i32
    %c0_i32_10 = arith.constant 0 : i32
    %13 = arith.cmpi ne, %12, %c0_i32_10 : i32
    scf.if %13 {
      %c0_11 = arith.constant 0 : index
      %c0_12 = arith.constant 0 : index
      %14 = vector.load %arg4[%c0_11, %c0_12] : memref<1x8xf32, #tpu.memory_space<vmem>>, vector<1x8xf32>
      %cst_13 = arith.constant 2.500000e-01 : f32
      %15 = vector.broadcast %cst_13 : f32 to vector<1x8xf32>
      %16 = arith.mulf %14, %15 : vector<1x8xf32>
      %c0_14 = arith.constant 0 : index
      %c0_15 = arith.constant 0 : index
      %17 = vector.load %arg4[%c0_14, %c0_15] : memref<1x8xf32, #tpu.memory_space<vmem>>, vector<1x8xf32>
      tpu.vector_store %arg4[%c0_14, %c0_15], %16 {strides = array<i32>} : memref<1x8xf32, #tpu.memory_space<vmem>>, vector<1x8xf32>,
    } else {
    }
    return
  }
  func.func @transform_0(%arg0: i32, %arg1: i32) -> (i32, i32) {
    %c1_i32 = arith.constant 1 : i32
    %0 = arith.muli %arg0, %c1_i32 : i32
    %1 = arith.addi %0, %arg1 : i32
    %c0_i32 = arith.constant 0 : i32
    %c0_i32_0 = arith.constant 0 : i32
    return %c0_i32, %1 : i32, i32
  }
  func.func @transform_1(%arg0: i32, %arg1: i32) -> (i32, i32) {
    %c1_i32 = arith.constant 1 : i32
    %0 = arith.muli %arg0, %c1_i32 : i32
    %1 = arith.addi %0, %arg1 : i32
    %c0_i32 = arith.constant 0 : i32
    %c0_i32_0 = arith.constant 0 : i32
    return %c0_i32, %1 : i32, i32
  }
  func.func @transform_2(%arg0: i32, %arg1: i32) -> (i32, i32) {
    %c0_i32 = arith.constant 0 : i32
    %c0_i32_0 = arith.constant 0 : i32
    return %arg0, %c0_i32 : i32, i32
  }
}

</mosaic_0001>

<bundles_post_ra>
// kernel: tpu_custom_call.1
= control target key start
LH: loop header
LB: loop body
LE: loop exit
PB: predicated region body
PF: predicated region fallthrough
CT: control target
= control target key end

     0   :  { %7 = vsyncpa [#allocation3], 0  ;;  %s266_s0 = inlined_call_operand.hbm [shape: f32[4,128], index: 0, kind: input, shape index: {}]   ;;  %s267_s1 = inlined_call_operand.hbm [shape: f32[8,128], index: 1, kind: input, shape index: {}]   ;;  %s268_s2 = inlined_call_operand.hbm [shape: f32[1,8], index: 2, kind: output, shape index: {}]  }
   0x1   :  { %8 = vsyncpa [#allocation6], 0 }
   0x2   :  { %9 = vsyncpa [#allocation4], 0  ;;  %s234_s9 = smov [#allocation2]   ;;  %s235_s11 = smov [#allocation5]  }
   0x3   :  { %s19_s10 = sshll.u32 %s234_s9, 4  ;;  %s32_s12 = sshll.u32 %s235_s11, 4  ;;  %s20_s10 = int_to_ptr.vmem [resolvable:$true] %s19_s10  ;;  %s33_s12 = int_to_ptr.vmem [resolvable:$true] %s32_s12 }
   0x4   :  { %s176_s13 = scalar_lea.vmem %s20_s10, 64  ;;  %p181_p1 = scmp.lt.s32.totalorder %s20_s10, %s20_s10 }
   0x5   :  { %p177_p0 = scmp.ne.s32.totalorder %s20_s10, %s176_s13  ;;  %p182_p2 = scmp.lt.s32.totalorder %s176_s13, %s176_s13 }
   0x7   :  { %p183_p3 = por %p182_p2, %p181_p1 }
   0x9   :  { %p184_p4 = pnand %p183_p3, %p177_p0 }
   0xb   :  { %187 = shalt.err (!%p184_p4)
}
   0xc   :  { %22 = dma.hbm_to_vmem [thread:$0]  %s266_s0, 64, %s20_s10, [#allocation3]  }
   0xd   :  { %s196_s16 = scalar_lea.vmem %s33_s12, 128  ;;  %p201_p6 = scmp.lt.s32.totalorder %s33_s12, %s33_s12 }
   0xe   :  { %p197_p5 = scmp.ne.s32.totalorder %s33_s12, %s196_s16  ;;  %p202_p7 = scmp.lt.s32.totalorder %s196_s16, %s196_s16 }
  0x10   :  { %p203_p8 = por %p202_p7, %p201_p6 }
  0x12   :  { %p204_p9 = pnand %p203_p8, %p197_p5 }
  0x14   :  { %207 = shalt.err (!%p204_p9)
}
  0x15   :  { %35 = dma.hbm_to_vmem [thread:$0]  %s267_s1, 128, %s33_s12, [#allocation6]  }
  0x16   :  { %228 = dma.done.wait [#allocation3], 64  }
  0x17   :  { %229 = vsyncadd [#allocation3], 4294967232 }
  0x18   :  { %230 = dma.done.wait [#allocation6], 128  }
  0x19   :  { %231 = vsyncadd [#allocation6], 4294967168  ;;  %vm48_vm0 = vcmask 57344   ;;  %v236_v0 = vmov 0.0   ;;  %vm237_vm1 = vmmov 0   ;;  %vm51_vm2 = vcmask 1043456  }
  0x1a   :  { %49 = vst.msk [vmem:[#allocation7] sm:$0x1] %vm48_vm0, %v236_v0  ;;  %158 = vmatprep.subr.mxu0 %v236_v0  ;;  %160 = vmatprep.mubr.msk.f32.mxu0 %vm237_vm1, %v236_v0  ;;  %v60_v1 = vld [vmem:[#allocation5] sm:$0xff]  ;;  %v50_v2 = vld [vmem:[#allocation2] sm:$0xf]  ;;  %s238_s0 = smov [#allocation7]  }
  0x1b   :  { %159 = vmatpush3.xpose.msra.mxu0 %v60_v1  ;;  %v52_v3 = vsel %vm51_vm2, %v50_v2, 0.0  ;;  %s146_s1 = sshll.u32 %s238_s0, 4  ;;  %s147_s1 = int_to_ptr.vmem [resolvable:$true] %s146_s1 }
  0x1c   :  { %v53_v4 = vrot.slane %v52_v3, 4  ;;  %s208_s19 = scalar_lea.vmem %s147_s1, 16  ;;  %s212_s20 = scalar_lea.vmem %s147_s1, 32 }
  0x1d   :  { %p209_p10 = scmp.ne.s32.totalorder %s147_s1, %s208_s19  ;;  %p213_p11 = scmp.lt.s32.totalorder %s147_s1, %s147_s1 }
  0x1e   :  { %v54_v5 = vadd.f32 %v53_v4, %v52_v3  ;;  %p214_p12 = scmp.lt.s32.totalorder %s212_s20, %s208_s19 }
  0x20   :  { %v55_v6 = vrot.slane %v54_v5, 2  ;;  %p215_p13 = por %p214_p12, %p213_p11 }
  0x21   :  { %v59_v10 = vld [vmem:[#allocation7] sm:$0x1] }
  0x22   :  { %v56_v7 = vadd.f32 %v55_v6, %v54_v5  ;;  %p216_p0 = pnand %p215_p13, %p209_p10 }
  0x24   :  { %v57_v8 = vrot.slane %v56_v7, 1 }
  0x26   :  { %v58_v9 = vadd.f32 %v57_v8, %v56_v7 }
  0x28   :  { %161 = vmatmul.mubr.f32.vlgmr.msra.gmra.mxu0 %v58_v9 }
  0xe8   :  { %v127_v11 = vpop.f32.mrf.mxu0 }
  0xe9   :  { %v131_v12 = vadd.f32 %v127_v11, %v59_v10 }
  0xea   :  { %v162_v13 = vpop.f32.mrf.mxu0 }
  0xeb   :  { %133 = vst.msk [vmem:[#allocation7] sm:$0x1] %vm48_vm0, %v131_v12 }
  0xf2   :  { %v137_v14 = vld [vmem:[#allocation7] sm:$0x1] }
  0xf3   :  { %v138_v15 = vmul.f32 0.25, %v137_v14 }
  0xf5   :  { %139 = vst.msk [vmem:[#allocation7] sm:$0x1] %vm48_vm0, %v138_v15 }
  0xf6   :  { %219 = shalt.err (!%p216_p0)
}
  0xf7   :  { %149 = dma.vmem_to_hbm [thread:$0]  %s147_s1, 16, %s268_s2, [#allocation4]  }
  0xf8   :  { %232 = dma.done.wait [#allocation4], 16  }
  0xf9   :  { %233 = vsyncadd [#allocation4], 4294967280 }
  0xfa   :  { %153 = vsyncpa [#allocation3], 1 }
  0xfb   :  { %154 = vsyncpa [#allocation6], 1 }
  0xfc   :  { %155 = vsyncpa [#allocation4], 1 }

</bundles_post_ra>
